<compile_context>
chip_gen: v5e
topology: v5e:2x2
jax: 0.10.0
libtpu: 0.0.40
codegen_flags: <defaults>
</compile_context>

<pallas_src>
import functools

import jax
import jax.numpy as jnp
from jax.experimental import pallas as pl
from jax.experimental.pallas import tpu as pltpu

_TILE = 256   # nominal row / reduction tile (multiple of 128)
_LANE = 128


def _round_up(x, m):
    return ((x + m - 1) // m) * m


# ---------------------------------------------------------------------------
# Pallas kernels
# ---------------------------------------------------------------------------
def _xw_kernel(x_ref, w_ref, xw_ref):
    """Hoisted feature transform: XW_tile = X_tile @ W (done once)."""
    xw_ref[...] = jnp.dot(
        x_ref[...], w_ref[...], preferred_element_type=jnp.float32
    ).astype(xw_ref.dtype)


def _gcn_dual_kernel(a_ref, xw_ref, b_ref, alpha_ref,
                     z_ref, zsum_ref, acc_ref, *, n_valid, tm, hp):
    """Fused clean+corrupted GCN aggregation sharing one A_norm tile DMA.

    grid = (row_tiles, k_tiles); k (node reduction) is the inner "arbitrary"
    axis.  xw_ref holds the lane-concatenated [tk, 2*hp] slab (clean | perm);
    acc_ref is a [tm, 2*hp] f32 accumulator.  PReLU epilogue + projection
    partial sum (clean half only) run at the last k step.
    """
    # All program_id reads hoisted OUT of the pl.when bodies (interpret-mode
    # lowering has no rule for program_id inside a cond branch).
    i = pl.program_id(0)
    k = pl.program_id(1)
    k_last = pl.num_programs(1) - 1

    # Row-validity mask for the projection mean (cheap [tm,1] iota per step).
    row = i * tm + jax.lax.broadcasted_iota(jnp.int32, (tm, 1), 0)
    valid = row < n_valid

    @pl.when(k == 0)
    def _init():
        acc_ref[...] = jnp.zeros_like(acc_ref)

    # Single MXU push covering both passes: [tm, tk] @ [tk, 2*hp].
    acc_ref[...] += jnp.dot(a_ref[...], xw_ref[...],
                            preferred_element_type=jnp.float32)

    @pl.when(k == k_last)
    def _epilogue():
        h = acc_ref[...] + b_ref[...]                       # [tm, 2*hp] f32
        z = jnp.where(h > 0.0, h, alpha_ref[...] * h)       # PReLU (f32)
        z_ref[...] = z.astype(z_ref.dtype)                  # lane-dense store

        # Per-row-tile partial sum of the CLEAN pass (for the projection
        # mean); padded rows masked so the mean is over the real N nodes.
        zsum = jnp.sum(jnp.where(valid, z[:, :hp], 0.0), axis=0, keepdims=True)
        zsum_ref[...] = zsum.reshape(1, 1, hp).astype(zsum_ref.dtype)


def _project_kernel(zsum_ref, wp_ref, bp_ref, g_ref, *, inv_n):
    """g = Linear(sigmoid(mean(z, axis=0))) from per-tile partial sums."""
    s = jax.nn.sigmoid(jnp.sum(zsum_ref[...], axis=0) * inv_n)      # [1, hp]
    g_ref[...] = (
        jnp.dot(s, wp_ref[...], preferred_element_type=jnp.float32) + bp_ref[...]
    ).astype(g_ref.dtype)


# ---------------------------------------------------------------------------
# pallas_call wrappers
# ---------------------------------------------------------------------------
def _vmem_limit_bytes(tm, tk, hp2):
    a_b = tm * tk * 2 * 2              # bf16 A tile, double-buffered
    xw_b = tk * hp2 * 2 * 2            # bf16 XW slab (both passes), 2 bufs
    zout_b = tm * hp2 * 4 * 2          # f32 z output block, 2 bufs
    zsum_b = (hp2 // 2) * 4 * 2
    par_b = 2 * hp2 * 4 * 2            # bias + alpha
    acc_b = tm * hp2 * 4               # f32 accumulator scratch
    total = a_b + xw_b + zout_b + zsum_b + par_b + acc_b
    # generous headroom, but stay well under v7x's 64 MiB physical VMEM
    return int(min(max(4 * total, 16 << 20), 48 << 20))


def feature_transform(x_pad, w_pad, *, tm):
    npad, f = x_pad.shape
    hp = w_pad.shape[1]
    return pl.pallas_call(
        _xw_kernel,
        out_shape=jax.ShapeDtypeStruct((npad, hp), jnp.bfloat16),
        grid_spec=pltpu.PrefetchScalarGridSpec(
            num_scalar_prefetch=0,
            grid=(npad // tm,),
            in_specs=[
                pl.BlockSpec((tm, f), lambda i: (i, 0)),
                pl.BlockSpec((f, hp), lambda i: (0, 0)),
            ],
            out_specs=pl.BlockSpec((tm, hp), lambda i: (i, 0)),
        ),
        compiler_params=pltpu.CompilerParams(
            dimension_semantics=("parallel",)),
    )(x_pad, w_pad)


def gcn_aggregate(a_pad, xw_both, b2, alpha2, *, n_valid, tm, tk):
    npad = a_pad.shape[0]
    hp2 = xw_both.shape[-1]
    hp = hp2 // 2
    n_rt = npad // tm
    n_kt = npad // tk
    kernel = functools.partial(_gcn_dual_kernel, n_valid=n_valid, tm=tm, hp=hp)
    return pl.pallas_call(
        kernel,
        out_shape=(
            jax.ShapeDtypeStruct((npad, hp2), jnp.float32),     # [z | zn]
            jax.ShapeDtypeStruct((n_rt, 1, hp), jnp.float32),   # partial sums
        ),
        grid_spec=pltpu.PrefetchScalarGridSpec(
            num_scalar_prefetch=0,
            grid=(n_rt, n_kt),
            in_specs=[
                pl.BlockSpec((tm, tk), lambda i, k: (i, k)),      # A (bf16)
                pl.BlockSpec((tk, hp2), lambda i, k: (k, 0)),     # XW slab
                pl.BlockSpec((1, hp2), lambda i, k: (0, 0)),      # bias
                pl.BlockSpec((1, hp2), lambda i, k: (0, 0)),      # alpha
            ],
            out_specs=(
                pl.BlockSpec((tm, hp2), lambda i, k: (i, 0)),
                pl.BlockSpec((1, 1, hp), lambda i, k: (i, 0, 0)),
            ),
            scratch_shapes=[pltpu.VMEM((tm, hp2), jnp.float32)],
        ),
        compiler_params=pltpu.CompilerParams(
            dimension_semantics=("parallel", "arbitrary"),
            vmem_limit_bytes=_vmem_limit_bytes(tm, tk, hp2),
        ),
    )(a_pad, xw_both, b2, alpha2)


def project(zsum_parts, wp_pad, bp_pad, *, inv_n):
    n_rt, _, hp = zsum_parts.shape
    kernel = functools.partial(_project_kernel, inv_n=inv_n)
    return pl.pallas_call(
        kernel,
        out_shape=jax.ShapeDtypeStruct((1, hp), jnp.float32),
        in_specs=[
            pl.BlockSpec((n_rt, 1, hp), lambda: (0, 0, 0)),
            pl.BlockSpec((hp, hp), lambda: (0, 0)),
            pl.BlockSpec((1, hp), lambda: (0, 0)),
        ],
        out_specs=pl.BlockSpec((1, hp), lambda: (0, 0)),
    )(zsum_parts, wp_pad, bp_pad)


# ---------------------------------------------------------------------------
# Plain-JAX glue (graph build, padding, corruption) + forward
# ---------------------------------------------------------------------------
def build_norm_adjacency(edge_index, num_nodes):
    """Dense GCN-normalized adjacency with deduplicated self loops."""
    src, dst = edge_index
    a = jnp.zeros((num_nodes, num_nodes), jnp.float32)
    # .set (not .add): duplicate edges deliberately collapse to weight 1.
    a = a.at[src, dst].set(1.0)
    a = a.at[dst, src].set(1.0)                      # undirected
    diag = jnp.arange(num_nodes)
    a = a.at[diag, diag].set(1.0)                    # self loops, dedup-safe
    deg = a.sum(axis=1)
    d_inv_sqrt = jnp.where(deg > 0, jax.lax.rsqrt(deg), 0.0)
    return a * d_inv_sqrt[:, None] * d_inv_sqrt[None, :]


@jax.jit
def dgi_encoder_forward(x, edge_index, params, perm_key):
    """Mirrors Encoder.forward: returns (z, g, zn)."""
    n, f = x.shape
    h = params["w"].shape[1]

    hp = _round_up(h, _LANE)                     # lane-dense hidden dim
    tm = min(_TILE, _round_up(n, _LANE))
    npad = _round_up(n, tm)
    tk = tm

    a = build_norm_adjacency(edge_index, n)
    a_pad = jnp.pad(a, ((0, npad - n), (0, npad - n))).astype(jnp.bfloat16)
    x_pad = jnp.pad(x, ((0, npad - n), (0, 0)))
    w_pad = jnp.zeros((f, hp), jnp.float32).at[:, :h].set(params["w"])
    b_pad = jnp.zeros((1, hp), jnp.float32).at[:, :h].set(params["b"])
    alpha_pad = jnp.zeros((1, hp), jnp.float32).at[:, :h].set(params["alpha"])
    wp_pad = jnp.zeros((hp, hp), jnp.float32).at[:h, :h].set(params["wp_t"])
    bp_pad = jnp.zeros((1, hp), jnp.float32).at[:, :h].set(params["bp"])

    # 1) hoisted feature transform (done once, bf16 output)
    xw = feature_transform(x_pad, w_pad, tm=tm)                  # [npad, hp]

    # 2) corruption: permute XW rows ((X[perm]) @ W == (X @ W)[perm], exact)
    perm = jax.random.permutation(perm_key, n)
    xw_perm = jnp.concatenate(
        [jnp.take(xw, perm, axis=0), jnp.zeros((npad - n, hp), xw.dtype)],
        axis=0)
    # Lane-concatenate clean | corrupted so one A tile feeds one MXU push.
    xw_both = jnp.concatenate([xw, xw_perm], axis=1)             # [npad, 2hp]
    b2 = jnp.concatenate([b_pad, b_pad], axis=1)                 # [1, 2hp]
    alpha2 = jnp.concatenate([alpha_pad, alpha_pad], axis=1)     # [1, 2hp]

    # 3) fused clean + corrupted aggregation (A_norm read from HBM once)
    z_both, zsum_parts = gcn_aggregate(
        a_pad, xw_both, b2, alpha2, n_valid=n, tm=tm, tk=tk)

    # 4) projection head from per-row-tile partial sums (no z re-read)
    g_pad = project(zsum_parts, wp_pad, bp_pad, inv_n=1.0 / n)

    z = z_both[:n, :h]
    zn = z_both[:n, hp:hp + h]
    g = g_pad[:, :h]
    return z, g, zn


def _reference_forward(x, edge_index, params, perm):
    """Pure-JAX f32 reference mirroring the PyTorch module."""
    n = x.shape[0]
    a = build_norm_adjacency(edge_index, n)

    def enc(feat):
        hh = a @ (feat @ params["w"]) + params["b"]
        return jnp.where(hh > 0, hh, params["alpha"] * hh)

    z = enc(x)
    s = jax.nn.sigmoid(jnp.mean(z, axis=0, keepdims=True))
    g = s @ params["wp_t"] + params["bp"]
    zn = enc(x[perm])
    return z, g, zn


# ---------------------------------------------------------------------------
# Main
# ---------------------------------------------------------------------------
if __name__ == "__main__":
    N, F, H = 16, 8, 32          # nodes, in-features, hidden_dim
    NUM_EDGES = 40

    root = jax.random.PRNGKey(0)
    k_x, k_e, k_w, k_wp, k_bp, k_perm = jax.random.split(root, 6)

    x = jax.random.normal(k_x, (N, F), jnp.float32)
    edge_index = jax.random.randint(k_e, (2, NUM_EDGES), 0, N, jnp.int32)

    bound_w = 1.0 / jnp.sqrt(jnp.float32(F))
    bound_p = 1.0 / jnp.sqrt(jnp.float32(H))   # PyG `uniform(hidden_dim, weight)`
    params = {
        # GCN layer: W [F, H], bias [1, H], PReLU per-channel alpha [1, H]
        "w": jax.random.uniform(k_w, (F, H), jnp.float32, -bound_w, bound_w),
        "b": jnp.zeros((1, H), jnp.float32),
        "alpha": jnp.full((1, H), 0.25, jnp.float32),
        # Projection Linear(H, H): stored transposed [H_in, H_out], bias [1, H]
        "wp_t": jax.random.uniform(k_wp, (H, H), jnp.float32, -bound_p, bound_p),
        "bp": jax.random.uniform(k_bp, (1, H), jnp.float32, -bound_p, bound_p),
    }

    z, g, zn = dgi_encoder_forward(x, edge_index, params, k_perm)
    jax.block_until_ready((z, g, zn))

    assert z.shape == (N, H) and g.shape == (1, H) and zn.shape == (N, H)
    assert jnp.all(jnp.isfinite(z)) and jnp.all(jnp.isfinite(g)) and jnp.all(jnp.isfinite(zn))

    # Cross-check against a pure-JAX f32 reference (kernel streams bf16 A/XW,
    # so tolerances are loose but far tighter than any numerical blow-up).
    perm = jax.random.permutation(k_perm, N)
    z_ref, g_ref, zn_ref = _reference_forward(x, edge_index, params, perm)
    assert jnp.allclose(z, z_ref, atol=1e-1, rtol=1e-1)
    assert jnp.allclose(g, g_ref, atol=1e-1, rtol=1e-1)
    assert jnp.allclose(zn, zn_ref, atol=1e-1, rtol=1e-1)

    print("KERNEL_OK")
</pallas_src>

<mosaic_0001>
module attributes {stable_mosaic.version = 11 : i64} {
  func.func @_xw_kernel(%arg0: i32, %arg1: memref<128x8xf32, #tpu.memory_space<vmem>>, %arg2: memref<8x128xf32, #tpu.memory_space<vmem>>, %arg3: memref<128x128xbf16, #tpu.memory_space<vmem>>) attributes {dimension_semantics = [#tpu.dimension_semantics<parallel>], iteration_bounds = array<i64: 1>, scalar_prefetch = 0 : i64, scratch_operands = 0 : i64, tpu.core_type = #tpu.core_type<tc>, window_params = [{transform_indices = @transform_0, window_bounds = array<i64: 128, 8>}, {pipeline_mode = #tpu.pipeline_mode<synchronous>, transform_indices = @transform_1, window_bounds = array<i64: 8, 128>}, {transform_indices = @transform_2, window_bounds = array<i64: 128, 128>}]} {
    %c0 = arith.constant 0 : index
    %c0_0 = arith.constant 0 : index
    %0 = vector.load %arg1[%c0, %c0_0] : memref<128x8xf32, #tpu.memory_space<vmem>>, vector<128x8xf32>
    %c0_1 = arith.constant 0 : index
    %c0_2 = arith.constant 0 : index
    %1 = vector.load %arg2[%c0_1, %c0_2] : memref<8x128xf32, #tpu.memory_space<vmem>>, vector<8x128xf32>
    %cst = arith.constant dense<0.000000e+00> : vector<128x128xf32>
    %2 = tpu.matmul %0, %1, %cst {dimension_numbers = #tpu.dot_dimension_numbers<[1], [0], [0], [1], [0, 0, 1, 1], [], []>} : vector<128x8xf32>, vector<8x128xf32>, vector<128x128xf32> -> vector<128x128xf32>
    %3 = arith.truncf %2 : vector<128x128xf32> to vector<128x128xbf16>
    %c0_3 = arith.constant 0 : index
    %c0_4 = arith.constant 0 : index
    %4 = vector.load %arg3[%c0_3, %c0_4] : memref<128x128xbf16, #tpu.memory_space<vmem>>, vector<128x128xbf16>
    tpu.vector_store %arg3[%c0_3, %c0_4], %3 {strides = array<i32>} : memref<128x128xbf16, #tpu.memory_space<vmem>>, vector<128x128xbf16>,
    return
  }
  func.func @transform_0(%arg0: i32) -> (i32, i32) {
    %c0_i32 = arith.constant 0 : i32
    %c0_i32_0 = arith.constant 0 : i32
    return %arg0, %c0_i32 : i32, i32
  }
  func.func @transform_1(%arg0: i32) -> (i32, i32) {
    %c0_i32 = arith.constant 0 : i32
    %c0_i32_0 = arith.constant 0 : i32
    %c0_i32_1 = arith.constant 0 : i32
    return %c0_i32, %c0_i32_0 : i32, i32
  }
  func.func @transform_2(%arg0: i32) -> (i32, i32) {
    %c0_i32 = arith.constant 0 : i32
    %c0_i32_0 = arith.constant 0 : i32
    return %arg0, %c0_i32 : i32, i32
  }
}

module attributes {stable_mosaic.version = 11 : i64} {
  func.func @_gcn_dual_kernel(%arg0: i32, %arg1: i32, %arg2: memref<128x128xbf16, #tpu.memory_space<vmem>>, %arg3: memref<128x256xbf16, #tpu.memory_space<vmem>>, %arg4: memref<1x256xf32, #tpu.memory_space<vmem>>, %arg5: memref<1x256xf32, #tpu.memory_space<vmem>>, %arg6: memref<128x256xf32, #tpu.memory_space<vmem>>, %arg7: memref<1x1x128xf32, #tpu.memory_space<vmem>>, %arg8: memref<128x256xf32, #tpu.memory_space<vmem>>) attributes {dimension_semantics = [#tpu.dimension_semantics<parallel>, #tpu.dimension_semantics<arbitrary>], iteration_bounds = array<i64: 1, 1>, scalar_prefetch = 0 : i64, scratch_operands = 1 : i64, tpu.core_type = #tpu.core_type<tc>, window_params = [{transform_indices = @transform_0, window_bounds = array<i64: 128, 128>}, {transform_indices = @transform_1, window_bounds = array<i64: 128, 256>}, {pipeline_mode = #tpu.pipeline_mode<synchronous>, transform_indices = @transform_2, window_bounds = array<i64: 1, 256>}, {pipeline_mode = #tpu.pipeline_mode<synchronous>, transform_indices = @transform_3, window_bounds = array<i64: 1, 256>}, {transform_indices = @transform_4, window_bounds = array<i64: 128, 256>}, {transform_indices = @transform_5, window_bounds = array<i64: 1, 1, 128>}]} {
    %c128_i32 = arith.constant 128 : i32
    %0 = arith.muli %arg0, %c128_i32 : i32
    %1 = tpu.iota {dimensions = array<i32: 0>} : vector<128x1xi32>
    %2 = vector.broadcast %0 : i32 to vector<128x1xi32>
    %3 = arith.addi %2, %1 : vector<128x1xi32>
    %c16_i32 = arith.constant 16 : i32
    %4 = vector.broadcast %c16_i32 : i32 to vector<128x1xi32>
    %5 = arith.cmpi slt, %3, %4 : vector<128x1xi32>
    %c0_i32 = arith.constant 0 : i32
    %6 = arith.cmpi eq, %arg1, %c0_i32 : i32
    %7 = arith.extui %6 : i1 to i32
    %c0_i32_0 = arith.constant 0 : i32
    %8 = arith.cmpi ne, %7, %c0_i32_0 : i32
    scf.if %8 {
      %cst_10 = arith.constant 0.000000e+00 : f32
      %18 = vector.broadcast %cst_10 : f32 to vector<128x256xf32>
      %c0_11 = arith.constant 0 : index
      %c0_12 = arith.constant 0 : index
      %19 = vector.load %arg8[%c0_11, %c0_12] : memref<128x256xf32, #tpu.memory_space<vmem>>, vector<128x256xf32>
      tpu.vector_store %arg8[%c0_11, %c0_12], %18 {strides = array<i32>} : memref<128x256xf32, #tpu.memory_space<vmem>>, vector<128x256xf32>,
    } else {
    }
    %c0 = arith.constant 0 : index
    %c0_1 = arith.constant 0 : index
    %9 = vector.load %arg8[%c0, %c0_1] : memref<128x256xf32, #tpu.memory_space<vmem>>, vector<128x256xf32>
    %c0_2 = arith.constant 0 : index
    %c0_3 = arith.constant 0 : index
    %10 = vector.load %arg2[%c0_2, %c0_3] : memref<128x128xbf16, #tpu.memory_space<vmem>>, vector<128x128xbf16>
    %c0_4 = arith.constant 0 : index
    %c0_5 = arith.constant 0 : index
    %11 = vector.load %arg3[%c0_4, %c0_5] : memref<128x256xbf16, #tpu.memory_space<vmem>>, vector<128x256xbf16>
    %cst = arith.constant dense<0.000000e+00> : vector<128x256xf32>
    %12 = tpu.matmul %10, %11, %cst {dimension_numbers = #tpu.dot_dimension_numbers<[1], [0], [0], [1], [0, 0, 1, 1], [], []>} : vector<128x128xbf16>, vector<128x256xbf16>, vector<128x256xf32> -> vector<128x256xf32>
    %13 = arith.addf %9, %12 : vector<128x256xf32>
    %c0_6 = arith.constant 0 : index
    %c0_7 = arith.constant 0 : index
    %14 = vector.load %arg8[%c0_6, %c0_7] : memref<128x256xf32, #tpu.memory_space<vmem>>, vector<128x256xf32>
    tpu.vector_store %arg8[%c0_6, %c0_7], %13 {strides = array<i32>} : memref<128x256xf32, #tpu.memory_space<vmem>>, vector<128x256xf32>,
    %c0_i32_8 = arith.constant 0 : i32
    %15 = arith.cmpi eq, %arg1, %c0_i32_8 : i32
    %16 = arith.extui %15 : i1 to i32
    %c0_i32_9 = arith.constant 0 : i32
    %17 = arith.cmpi ne, %16, %c0_i32_9 : i32
    scf.if %17 {
      %c0_10 = arith.constant 0 : index
      %c0_11 = arith.constant 0 : index
      %18 = vector.load %arg8[%c0_10, %c0_11] : memref<128x256xf32, #tpu.memory_space<vmem>>, vector<128x256xf32>
      %c0_12 = arith.constant 0 : index
      %c0_13 = arith.constant 0 : index
      %19 = vector.load %arg4[%c0_12, %c0_13] : memref<1x256xf32, #tpu.memory_space<vmem>>, vector<1x256xf32>
      %20 = vector.broadcast %19 : vector<1x256xf32> to vector<128x256xf32>
      %21 = arith.addf %18, %20 : vector<128x256xf32>
      %cst_14 = arith.constant 0.000000e+00 : f32
      %22 = vector.broadcast %cst_14 : f32 to vector<128x256xf32>
      %23 = arith.cmpf ogt, %21, %22 : vector<128x256xf32>
      %c0_15 = arith.constant 0 : index
      %c0_16 = arith.constant 0 : index
      %24 = vector.load %arg5[%c0_15, %c0_16] : memref<1x256xf32, #tpu.memory_space<vmem>>, vector<1x256xf32>
      %25 = vector.broadcast %24 : vector<1x256xf32> to vector<128x256xf32>
      %26 = arith.mulf %25, %21 : vector<128x256xf32>
      %27 = arith.select %23, %21, %26 : vector<128x256xi1>, vector<128x256xf32>
      %c0_17 = arith.constant 0 : index
      %c0_18 = arith.constant 0 : index
      %28 = vector.load %arg6[%c0_17, %c0_18] : memref<128x256xf32, #tpu.memory_space<vmem>>, vector<128x256xf32>
      tpu.vector_store %arg6[%c0_17, %c0_18], %27 {strides = array<i32>} : memref<128x256xf32, #tpu.memory_space<vmem>>, vector<128x256xf32>,
      %29 = vector.extract_strided_slice %27 {offsets = [0, 0], sizes = [128, 128], strides = [1, 1]} : vector<128x256xf32> to vector<128x128xf32>
      %cst_19 = arith.constant 0.000000e+00 : f32
      %30 = vector.shape_cast %5 : vector<128x1xi1> to vector<128x1xi1>
      %31 = vector.broadcast %30 : vector<128x1xi1> to vector<128x128xi1>
      %32 = vector.broadcast %cst_19 : f32 to vector<128x128xf32>
      %33 = arith.select %31, %29, %32 : vector<128x128xi1>, vector<128x128xf32>
      %cst_20 = arith.constant dense<0.000000e+00> : vector<128xf32>
      %34 = vector.multi_reduction <add>, %33, %cst_20 [0] : vector<128x128xf32> to vector<128xf32>
      %35 = vector.shape_cast %34 : vector<128xf32> to vector<1x128xf32>
      %36 = vector.shape_cast %35 : vector<1x128xf32> to vector<1x1x128xf32>
      %c0_21 = arith.constant 0 : index
      %c0_22 = arith.constant 0 : index
      %c0_23 = arith.constant 0 : index
      %37 = vector.load %arg7[%c0_21, %c0_22, %c0_23] : memref<1x1x128xf32, #tpu.memory_space<vmem>>, vector<1x1x128xf32>
      tpu.vector_store %arg7[%c0_21, %c0_22, %c0_23], %36 {strides = array<i32>} : memref<1x1x128xf32, #tpu.memory_space<vmem>>, vector<1x1x128xf32>,
    } else {
    }
    return
  }
  func.func @transform_0(%arg0: i32, %arg1: i32) -> (i32, i32) {
    %c0_i32 = arith.constant 0 : i32
    return %arg0, %arg1 : i32, i32
  }
  func.func @transform_1(%arg0: i32, %arg1: i32) -> (i32, i32) {
    %c0_i32 = arith.constant 0 : i32
    %c0_i32_0 = arith.constant 0 : i32
    return %arg1, %c0_i32 : i32, i32
  }
  func.func @transform_2(%arg0: i32, %arg1: i32) -> (i32, i32) {
    %c0_i32 = arith.constant 0 : i32
    %c0_i32_0 = arith.constant 0 : i32
    %c0_i32_1 = arith.constant 0 : i32
    return %c0_i32, %c0_i32_0 : i32, i32
  }
  func.func @transform_3(%arg0: i32, %arg1: i32) -> (i32, i32) {
    %c0_i32 = arith.constant 0 : i32
    %c0_i32_0 = arith.constant 0 : i32
    %c0_i32_1 = arith.constant 0 : i32
    return %c0_i32, %c0_i32_0 : i32, i32
  }
  func.func @transform_4(%arg0: i32, %arg1: i32) -> (i32, i32) {
    %c0_i32 = arith.constant 0 : i32
    %c0_i32_0 = arith.constant 0 : i32
    return %arg0, %c0_i32 : i32, i32
  }
  func.func @transform_5(%arg0: i32, %arg1: i32) -> (i32, i32, i32) {
    %c0_i32 = arith.constant 0 : i32
    %c0_i32_0 = arith.constant 0 : i32
    %c0_i32_1 = arith.constant 0 : i32
    return %arg0, %c0_i32, %c0_i32_0 : i32, i32, i32
  }
}

module attributes {stable_mosaic.version = 11 : i64} {
  func.func @_project_kernel(%arg0: memref<1x1x128xf32, #tpu.memory_space<vmem>>, %arg1: memref<128x128xf32, #tpu.memory_space<vmem>>, %arg2: memref<1x128xf32, #tpu.memory_space<vmem>>, %arg3: memref<1x128xf32, #tpu.memory_space<vmem>>) attributes {dimension_semantics = [], scalar_prefetch = 0 : i64, scratch_operands = 0 : i64, tpu.core_type = #tpu.core_type<tc>} {
    %c0 = arith.constant 0 : index
    %c0_0 = arith.constant 0 : index
    %c0_1 = arith.constant 0 : index
    %0 = vector.load %arg0[%c0, %c0_0, %c0_1] : memref<1x1x128xf32, #tpu.memory_space<vmem>>, vector<1x1x128xf32>
    %cst = arith.constant dense<0.000000e+00> : vector<1x128xf32>
    %1 = vector.multi_reduction <add>, %0, %cst [0] : vector<1x1x128xf32> to vector<1x128xf32>
    %cst_2 = arith.constant 6.250000e-02 : f32
    %2 = vector.broadcast %cst_2 : f32 to vector<1x128xf32>
    %3 = arith.mulf %1, %2 : vector<1x128xf32>
    %4 = arith.negf %3 : vector<1x128xf32>
    %5 = math.exp %4 : vector<1x128xf32>
    %cst_3 = arith.constant 1.000000e+00 : f32
    %6 = vector.broadcast %cst_3 : f32 to vector<1x128xf32>
    %7 = arith.addf %6, %5 : vector<1x128xf32>
    %8 = arith.divf %6, %7 : vector<1x128xf32>
    %c0_4 = arith.constant 0 : index
    %c0_5 = arith.constant 0 : index
    %9 = vector.load %arg1[%c0_4, %c0_5] : memref<128x128xf32, #tpu.memory_space<vmem>>, vector<128x128xf32>
    %cst_6 = arith.constant dense<0.000000e+00> : vector<1x128xf32>
    %10 = tpu.matmul %8, %9, %cst_6 {dimension_numbers = #tpu.dot_dimension_numbers<[1], [0], [0], [1], [0, 0, 1, 1], [], []>} : vector<1x128xf32>, vector<128x128xf32>, vector<1x128xf32> -> vector<1x128xf32>
    %c0_7 = arith.constant 0 : index
    %c0_8 = arith.constant 0 : index
    %11 = vector.load %arg2[%c0_7, %c0_8] : memref<1x128xf32, #tpu.memory_space<vmem>>, vector<1x128xf32>
    %12 = arith.addf %10, %11 : vector<1x128xf32>
    %c0_9 = arith.constant 0 : index
    %c0_10 = arith.constant 0 : index
    %13 = vector.load %arg3[%c0_9, %c0_10] : memref<1x128xf32, #tpu.memory_space<vmem>>, vector<1x128xf32>
    tpu.vector_store %arg3[%c0_9, %c0_10], %12 {strides = array<i32>} : memref<1x128xf32, #tpu.memory_space<vmem>>, vector<1x128xf32>,
    return
  }
}

</mosaic_0001>

<bundles_post_ra>
// kernel: dgi_encoder_forward.3
= control target key start
LH: loop header
LB: loop body
LE: loop exit
PB: predicated region body
PF: predicated region fallthrough
CT: control target
= control target key end

     0   :  { %vm28_vm0 = vcmask 64512   ;;  %s350_s1 = inlined_call_operand.vmem [shape: f32[8,128], index: 1, kind: input, shape index: {}]   ;;  %s351_s0 = inlined_call_operand.vmem [shape: f32[128,8], index: 0, kind: input, shape index: {}]   ;;  %s352_s2 = inlined_call_operand.vmem [shape: bf16[128,128], index: 2, kind: output, shape index: {}]  }
   0x1   :  { %v27_v0 = vld [vmem:[%s350_s1] sm:$0xff]  ;;  %v12_v5 = vld [vmem:[%s351_s0 + $0x8] sm:$0xff]  ;;  %v13_v9 = vld [vmem:[%s351_s0 + $0x10] sm:$0xff] }
   0x2   :  { %v11_v1 = vld [vmem:[%s351_s0] sm:$0xff]  ;;  %92 = vmatpush.msra.mxu0 %v27_v0  ;;  %241 = vmatpush.msra.mxu1 %v27_v0  ;;  %v16_v6 = vld [vmem:[%s351_s0 + $0x28] sm:$0xff]  ;;  %v17_v10 = vld [vmem:[%s351_s0 + $0x30] sm:$0xff] }
   0x3   :  { %v15_v2 = vld [vmem:[%s351_s0 + $0x20] sm:$0xff]  ;;  %242 = vmatpush.msra.mxu2 %v27_v0  ;;  %243 = vmatpush.msra.mxu3 %v27_v0  ;;  %v20_v7 = vld [vmem:[%s351_s0 + $0x48] sm:$0xff]  ;;  %v21_v11 = vld [vmem:[%s351_s0 + $0x50] sm:$0xff] }
   0x4   :  { %v19_v3 = vld [vmem:[%s351_s0 + $0x40] sm:$0xff]  ;;  %178 = vmatmul.msk.f32.vlgmr.msra.gmra.mxu0 %vm28_vm0, %v11_v1  ;;  %182 = vmatmul.msk.f32.vlgmr.msra.gmra.mxu1 %vm28_vm0, %v15_v2  ;;  %v24_v8 = vld [vmem:[%s351_s0 + $0x68] sm:$0xff]  ;;  %v25_v12 = vld [vmem:[%s351_s0 + $0x70] sm:$0xff] }
   0x5   :  { %v23_v4 = vld [vmem:[%s351_s0 + $0x60] sm:$0xff]  ;;  %186 = vmatmul.msk.f32.vlgmr.msra.gmra.mxu2 %vm28_vm0, %v19_v3  ;;  %v14_v13 = vld [vmem:[%s351_s0 + $0x18] sm:$0xff] }
   0x6   :  { %190 = vmatmul.msk.f32.vlgmr.msra.gmra.mxu3 %vm28_vm0, %v23_v4  ;;  %v18_v14 = vld [vmem:[%s351_s0 + $0x38] sm:$0xff] }
   0x7   :  { %v22_v15 = vld [vmem:[%s351_s0 + $0x58] sm:$0xff] }
   0x8   :  { %v26_v16 = vld [vmem:[%s351_s0 + $0x78] sm:$0xff] }
   0xc   :  { %179 = vmatmul.msk.f32.gmra.mxu0 %vm28_vm0, %v12_v5  ;;  %183 = vmatmul.msk.f32.gmra.mxu1 %vm28_vm0, %v16_v6 }
   0xd   :  { %187 = vmatmul.msk.f32.gmra.mxu2 %vm28_vm0, %v20_v7 }
   0xe   :  { %191 = vmatmul.msk.f32.gmra.mxu3 %vm28_vm0, %v24_v8 }
  0x14   :  { %180 = vmatmul.msk.f32.gmra.mxu0 %vm28_vm0, %v13_v9  ;;  %184 = vmatmul.msk.f32.gmra.mxu1 %vm28_vm0, %v17_v10 }
  0x15   :  { %188 = vmatmul.msk.f32.gmra.mxu2 %vm28_vm0, %v21_v11 }
  0x16   :  { %192 = vmatmul.msk.f32.gmra.mxu3 %vm28_vm0, %v25_v12 }
  0x1c   :  { %181 = vmatmul.msk.f32.gmra.mxu0 %vm28_vm0, %v14_v13  ;;  %185 = vmatmul.msk.f32.gmra.mxu1 %vm28_vm0, %v18_v14 }
  0x1d   :  { %189 = vmatmul.msk.f32.gmra.mxu2 %vm28_vm0, %v22_v15 }
  0x1e   :  { %193 = vmatmul.msk.f32.gmra.mxu3 %vm28_vm0, %v26_v16 }
  0x81   :  { %v94_v17 = vpop.f32.mrf.mxu0  ;;  %v106_v18 = vpop.f32.mrf.mxu1 }
  0x88   :  { %v118_v19 = vpop.f32.mrf.mxu2 }
  0x89   :  { %v130_v20 = vpop.f32.mrf.mxu3  ;;  %v97_v21 = vpop.f32.mrf.mxu0 }
  0x8a   :  { %v109_v22 = vpop.f32.mrf.mxu1  ;;  %v197_v23 = vpack.c.bf16 %v97_v21, %v94_v17 }
  0x8b   :  { %v207_v24 = vpack.c.bf16 %v109_v22, %v106_v18 }
  0x8c   :  { %198 = vst [vmem:[%s352_s2] sm:$0xff] %v197_v23  }
  0x8d   :  { %235 = vst [vmem:[%s352_s2 + $0x10] sm:$0xff] %v207_v24  }
  0x90   :  { %v121_v25 = vpop.f32.mrf.mxu2 }
  0x91   :  { %v133_v26 = vpop.f32.mrf.mxu3  ;;  %v217_v27 = vpack.c.bf16 %v121_v25, %v118_v19  ;;  %v100_v29 = vpop.f32.mrf.mxu0 }
  0x92   :  { %v227_v28 = vpack.c.bf16 %v133_v26, %v130_v20  ;;  %v112_v30 = vpop.f32.mrf.mxu1 }
  0x93   :  { %237 = vst [vmem:[%s352_s2 + $0x20] sm:$0xff] %v217_v27  }
  0x94   :  { %239 = vst [vmem:[%s352_s2 + $0x30] sm:$0xff] %v227_v28  }
  0x98   :  { %v124_v31 = vpop.f32.mrf.mxu2 }
  0x99   :  { %v136_v32 = vpop.f32.mrf.mxu3  ;;  %v103_v33 = vpop.f32.mrf.mxu0 }
  0x9a   :  { %v115_v34 = vpop.f32.mrf.mxu1  ;;  %v202_v35 = vpack.c.bf16 %v103_v33, %v100_v29 }
  0x9b   :  { %v212_v36 = vpack.c.bf16 %v115_v34, %v112_v30 }
  0x9c   :  { %234 = vst [vmem:[%s352_s2 + $0x8] sm:$0xff] %v202_v35  }
  0x9d   :  { %236 = vst [vmem:[%s352_s2 + $0x18] sm:$0xff] %v212_v36  }
  0xa0   :  { %v127_v37 = vpop.f32.mrf.mxu2 }
  0xa1   :  { %v139_v38 = vpop.f32.mrf.mxu3  ;;  %v222_v39 = vpack.c.bf16 %v127_v37, %v124_v31 }
  0xa2   :  { %v232_v40 = vpack.c.bf16 %v139_v38, %v136_v32 }
  0xa3   :  { %238 = vst [vmem:[%s352_s2 + $0x28] sm:$0xff] %v222_v39  }
  0xa4   :  { %240 = vst [vmem:[%s352_s2 + $0x38] sm:$0xff] %v232_v40  }

// kernel: dgi_encoder_forward.5
= control target key start
LH: loop header
LB: loop body
LE: loop exit
PB: predicated region body
PF: predicated region fallthrough
CT: control target
= control target key end

     0   :  { %s201_s0 = inlined_call_operand.vmem [shape: f32[1,1,128], index: 0, kind: input, shape index: {}]   ;;  %s202_s1 = inlined_call_operand.vmem [shape: f32[128,128], index: 1, kind: input, shape index: {}]   ;;  %s203_s2 = inlined_call_operand.vmem [shape: f32[1,128], index: 2, kind: input, shape index: {}]   ;;  %s204_s3 = inlined_call_operand.hbm [shape: f32[1,128], index: 3, kind: output, shape index: {}]  }
   0x1   :  { %v52_v0 = vld [vmem:[%s202_s1 + $0x78] sm:$0xff]  ;;  %v51_v1 = vld [vmem:[%s202_s1 + $0x70] sm:$0xff]  ;;  %v50_v2 = vld [vmem:[%s202_s1 + $0x68] sm:$0xff] }
   0x2   :  { %54 = vmatpush.msra.mxu0 %v52_v0  ;;  %v49_v3 = vld [vmem:[%s202_s1 + $0x60] sm:$0xff]  ;;  %v48_v5 = vld [vmem:[%s202_s1 + $0x58] sm:$0xff] }
   0x3   :  { %v15_v4 = vld [vmem:[%s201_s0] sm:$0x1] }
   0x4   :  { %55 = vmatpush.msra.mxu0 %v51_v1  ;;  %v91_v6 = vmul.f32 -0.0625, %v15_v4 }
   0x6   :  { %56 = vmatpush.msra.mxu0 %v50_v2 }
   0x7   :  { %8 = vsyncpa [#allocation3], 0  ;;  %v47_v7 = vld [vmem:[%s202_s1 + $0x50] sm:$0xff]  ;;  %v19_v8 = vmul.f32 1.442695, %v91_v6  ;;  %v46_v9 = vld [vmem:[%s202_s1 + $0x48] sm:$0xff] }
   0x8   :  { %57 = vmatpush.msra.mxu0 %v49_v3  ;;  %v45_v10 = vld [vmem:[%s202_s1 + $0x40] sm:$0xff]  ;;  %v44_v11 = vld [vmem:[%s202_s1 + $0x38] sm:$0xff]  ;;  %v43_v13 = vld [vmem:[%s202_s1 + $0x30] sm:$0xff]  ;;  %s123_s20 = smov [#allocation2]   ;;  %s82_s23 = sshll.u32 %s204_s3, 4  ;;  %s83_s23 = int_to_ptr.hbm [resolvable:$true] %s82_s23 }
   0x9   :  { %93 = vpow2.f32 %v19_v8  ;;  %v42_v15 = vld [vmem:[%s202_s1 + $0x28] sm:$0xff]  ;;  %v41_v16 = vld [vmem:[%s202_s1 + $0x20] sm:$0xff]  ;;  %v40_v17 = vld [vmem:[%s202_s1 + $0x18] sm:$0xff] }
   0xa   :  { %58 = vmatpush.msra.mxu0 %v48_v5  ;;  %v39_v18 = vld [vmem:[%s202_s1 + $0x10] sm:$0xff]  ;;  %v38_v20 = vld [vmem:[%s202_s1 + $0x8] sm:$0xff]  ;;  %v37_v23 = vld [vmem:[%s202_s1] sm:$0xff]  ;;  %s80_s1 = sshll.u32 %s123_s20, 4  ;;  %s81_s1 = int_to_ptr.vmem [resolvable:$true] %s80_s1 }
   0xb   :  { %v53_v31 = vld [vmem:[%s203_s2] sm:$0x1] }
   0xc   :  { %59 = vmatpush.msra.mxu0 %v47_v7 }
   0xe   :  { %60 = vmatpush.msra.mxu0 %v46_v9 }
   0xf   :  { %v94_v12 = vpop.eup %93 }
  0x10   :  { %61 = vmatpush.msra.mxu0 %v45_v10  ;;  %v21_v14 = vadd.f32 1.0, %v94_v12 }
  0x12   :  { %62 = vmatpush.msra.mxu0 %v44_v11  ;;  %95 = vrcp.f32 %v21_v14  ;;  %v33_v22 = vand.u32 2147483648, %v21_v14  ;;  %vm27_vm0 = vweird.f32 %v21_v14  ;;  %v31_v25 = vand.u32 2147483647, %v21_v14 }
  0x14   :  { %63 = vmatpush.msra.mxu0 %v43_v13  ;;  %v34_v27 = vor.u32 1.1754944e-38, %v33_v22  ;;  %vm32_vm3 = vcmp.eq.f32.partialorder %v31_v25, 8.507059e+37 }
  0x16   :  { %64 = vmatpush.msra.mxu0 %v42_v15 }
  0x18   :  { %65 = vmatpush.msra.mxu0 %v41_v16  ;;  %v96_v19 = vpop.eup %95 }
  0x19   :  { %v23_v21 = vmul.f32 %v96_v19, %v21_v14  ;;  %vm28_vm1 = vweird.f32 %v96_v19 }
  0x1a   :  { %66 = vmatpush.msra.mxu0 %v40_v17  ;;  %vm29_vm2 = vmor %vm27_vm0, %vm28_vm1 }
  0x1b   :  { %v24_v24 = vsub.f32 1.0, %v23_v21 }
  0x1c   :  { %67 = vmatpush.msra.mxu0 %v39_v18 }
  0x1d   :  { %v25_v26 = vmul.f32 %v96_v19, %v24_v24 }
  0x1e   :  { %68 = vmatpush.msra.mxu0 %v38_v20 }
  0x1f   :  { %v26_v28 = vadd.f32 %v96_v19, %v25_v26 }
  0x20   :  { %69 = vmatpush.msra.mxu0 %v37_v23 }
  0x21   :  { %v30_v29 = vsel %vm29_vm2, %v96_v19, %v26_v28 }
  0x22   :  { %v35_v30 = vsel %vm32_vm3, %v34_v27, %v30_v29 }
  0x23   :  { %70 = vmatmul.f32.vlgmr.msra.gmra.mxu0 %v35_v30 }
  0xa0   :  { %v71_v32 = vpop.f32.mrf.mxu0 }
  0xa1   :  { %v72_v33 = vadd.f32 %v71_v32, %v53_v31 }
  0xa3   :  { %74 = vst [vmem:[#allocation2] sm:$0x1] %v72_v33 }
  0xa4   :  { %85 = dma.vmem_to_hbm [thread:$0]  %s81_s1, 16, %s83_s23, [#allocation3]  }
  0xa5   :  { %121 = dma.done.wait [#allocation3], 16  }
  0xa6   :  { %122 = vsyncadd [#allocation3], 4294967280 }
  0xa7   :  { %90 = vsyncpa [#allocation3], 1 }

// kernel: dgi_encoder_forward.4
= control target key start
LH: loop header
LB: loop body
LE: loop exit
PB: predicated region body
PF: predicated region fallthrough
CT: control target
= control target key end

     0   :  { %s1208_s1 = inlined_call_operand.vmem [shape: bf16[128,256], index: 1, kind: input, shape index: {}]   ;;  %s1209_s0 = inlined_call_operand.vmem [shape: bf16[128,128], index: 0, kind: input, shape index: {}]   ;;  %s1210_s2 = inlined_call_operand.vmem [shape: f32[1,256], index: 2, kind: input, shape index: {}]   ;;  %s1211_s3 = inlined_call_operand.vmem [shape: f32[1,256], index: 3, kind: input, shape index: {}]   ;;  %s1212_s4 = inlined_call_operand.vmem [shape: f32[128,256], index: 4, kind: output, shape index: {0}]   ;;  %s1213_s5 = inlined_call_operand.vmem [shape: f32[1,1,128], index: 5, kind: output, shape index: {1}]  }
   0x1   :  { %v835_v0 = vld [vmem:[%s1208_s1 + $0x70] sm:$0xf]  ;;  %v864_v1 = vld [vmem:[%s1208_s1 + $0x74] sm:$0xf0]  ;;  %v863_v2 = vld [vmem:[%s1208_s1 + $0x74] sm:$0xf] }
   0x2   :  { %v836_v3 = vor.u32 %v864_v1, %v835_v0  ;;  %v837_v4 = vld [vmem:[%s1208_s1 + $0x78] sm:$0xf0]  ;;  %v827_v5 = vld [vmem:[%s1208_s1 + $0x60] sm:$0xf]  ;;  %v862_v6 = vld [vmem:[%s1208_s1 + $0x64] sm:$0xf0] }
   0x3   :  { %v840_v7 = vor.u32 %v863_v2, %v837_v4  ;;  %v861_v8 = vld [vmem:[%s1208_s1 + $0x64] sm:$0xf]  ;;  %v829_v9 = vld [vmem:[%s1208_s1 + $0x68] sm:$0xf0]  ;;  %v828_v10 = vor.u32 %v862_v6, %v827_v5  ;;  %v819_v12 = vld [vmem:[%s1208_s1 + $0x50] sm:$0xf] }
   0x4   :  { %298 = vmatpush.bf16.msra.mxu0 %v836_v3  ;;  %865 = vmatpush.bf16.msra.mxu2 %v836_v3  ;;  %v832_v11 = vor.u32 %v861_v8, %v829_v9  ;;  %v860_v13 = vld [vmem:[%s1208_s1 + $0x54] sm:$0xf0]  ;;  %v859_v14 = vld [vmem:[%s1208_s1 + $0x54] sm:$0xf]  ;;  %v821_v15 = vld [vmem:[%s1208_s1 + $0x58] sm:$0xf0] }
   0x5   :  { %347 = vmatpush.bf16.msra.mxu1 %v840_v7  ;;  %873 = vmatpush.bf16.msra.mxu3 %v840_v7  ;;  %v820_v16 = vor.u32 %v860_v13, %v819_v12  ;;  %v824_v17 = vor.u32 %v859_v14, %v821_v15  ;;  %v811_v18 = vld [vmem:[%s1208_s1 + $0x40] sm:$0xf]  ;;  %v858_v19 = vld [vmem:[%s1208_s1 + $0x44] sm:$0xf0]  ;;  %v857_v20 = vld [vmem:[%s1208_s1 + $0x44] sm:$0xf] }
   0x6   :  { %v813_v21 = vld [vmem:[%s1208_s1 + $0x48] sm:$0xf0]  ;;  %v812_v22 = vor.u32 %v858_v19, %v811_v18  ;;  %v803_v24 = vld [vmem:[%s1208_s1 + $0x30] sm:$0xf]  ;;  %v856_v25 = vld [vmem:[%s1208_s1 + $0x34] sm:$0xf0] }
   0x7   :  { %v816_v23 = vor.u32 %v857_v20, %v813_v21  ;;  %v855_v26 = vld [vmem:[%s1208_s1 + $0x34] sm:$0xf]  ;;  %v805_v27 = vld [vmem:[%s1208_s1 + $0x38] sm:$0xf0]  ;;  %v804_v28 = vor.u32 %v856_v25, %v803_v24  ;;  %v795_v30 = vld [vmem:[%s1208_s1 + $0x20] sm:$0xf] }
   0x8   :  { %299 = vmatpush.bf16.msra.mxu0 %v828_v10  ;;  %866 = vmatpush.bf16.msra.mxu2 %v828_v10  ;;  %v808_v29 = vor.u32 %v855_v26, %v805_v27  ;;  %v854_v31 = vld [vmem:[%s1208_s1 + $0x24] sm:$0xf0]  ;;  %v853_v32 = vld [vmem:[%s1208_s1 + $0x24] sm:$0xf]  ;;  %v797_v33 = vld [vmem:[%s1208_s1 + $0x28] sm:$0xf0] }
   0x9   :  { %348 = vmatpush.bf16.msra.mxu1 %v832_v11  ;;  %874 = vmatpush.bf16.msra.mxu3 %v832_v11  ;;  %v796_v34 = vor.u32 %v854_v31, %v795_v30  ;;  %v800_v35 = vor.u32 %v853_v32, %v797_v33  ;;  %v787_v36 = vld [vmem:[%s1208_s1 + $0x10] sm:$0xf]  ;;  %v852_v37 = vld [vmem:[%s1208_s1 + $0x14] sm:$0xf0]  ;;  %v851_v38 = vld [vmem:[%s1208_s1 + $0x14] sm:$0xf] }
   0xa   :  { %v789_v39 = vld [vmem:[%s1208_s1 + $0x18] sm:$0xf0]  ;;  %v788_v40 = vor.u32 %v852_v37, %v787_v36  ;;  %v779_v42 = vld [vmem:[%s1208_s1] sm:$0xf]  ;;  %v850_v43 = vld [vmem:[%s1208_s1 + $0x4] sm:$0xf0] }
   0xb   :  { %v792_v41 = vor.u32 %v851_v38, %v789_v39  ;;  %v849_v44 = vld [vmem:[%s1208_s1 + $0x4] sm:$0xf]  ;;  %v781_v45 = vld [vmem:[%s1208_s1 + $0x8] sm:$0xf0]  ;;  %v780_v46 = vor.u32 %v850_v43, %v779_v42  ;;  %v843_v52 = vld [vmem:[%s1209_s0 + $0x10] sm:$0xff] }
   0xc   :  { %300 = vmatpush.bf16.msra.mxu0 %v820_v16  ;;  %867 = vmatpush.bf16.msra.mxu2 %v820_v16  ;;  %v784_v47 = vor.u32 %v849_v44, %v781_v45  ;;  %v841_v48 = vld [vmem:[%s1209_s0] sm:$0xff]  ;;  %v842_v50 = vld [vmem:[%s1209_s0 + $0x8] sm:$0xff]  ;;  %v847_v53 = vld [vmem:[%s1209_s0 + $0x30] sm:$0xff] }
   0xd   :  { %349 = vmatpush.bf16.msra.mxu1 %v824_v17  ;;  %875 = vmatpush.bf16.msra.mxu3 %v824_v17  ;;  %v845_v49 = vld [vmem:[%s1209_s0 + $0x20] sm:$0xff]  ;;  %v846_v51 = vld [vmem:[%s1209_s0 + $0x28] sm:$0xff]  ;;  %v844_v54 = vld [vmem:[%s1209_s0 + $0x18] sm:$0xff] }
   0xe   :  { %v848_v55 = vld [vmem:[%s1209_s0 + $0x38] sm:$0xff]  ;;  %v495_v56 = vld [vmem:[%s1210_s2] sm:$0x3] }
   0xf   :  { %v565_v57 = vld [vmem:[%s1211_s3] sm:$0x3]  ;;  %v1037_v58 = vperm.slane %v495_v56, 0  ;;  %v1039_v59 = vperm.slane %v495_v56, 1 }
  0x10   :  { %301 = vmatpush.bf16.msra.mxu0 %v812_v22  ;;  %868 = vmatpush.bf16.msra.mxu2 %v812_v22  ;;  %v1041_v60 = vperm.slane %v565_v57, 0  ;;  %v1043_v62 = vperm.slane %v565_v57, 1 }
  0x11   :  { %350 = vmatpush.bf16.msra.mxu1 %v816_v23  ;;  %876 = vmatpush.bf16.msra.mxu3 %v816_v23 }
  0x14   :  { %302 = vmatpush.bf16.msra.mxu0 %v804_v28  ;;  %869 = vmatpush.bf16.msra.mxu2 %v804_v28 }
  0x15   :  { %351 = vmatpush.bf16.msra.mxu1 %v808_v29  ;;  %877 = vmatpush.bf16.msra.mxu3 %v808_v29 }
  0x18   :  { %303 = vmatpush.bf16.msra.mxu0 %v796_v34  ;;  %870 = vmatpush.bf16.msra.mxu2 %v796_v34 }
  0x19   :  { %352 = vmatpush.bf16.msra.mxu1 %v800_v35  ;;  %878 = vmatpush.bf16.msra.mxu3 %v800_v35 }
  0x1c   :  { %304 = vmatpush.bf16.msra.mxu0 %v788_v40  ;;  %871 = vmatpush.bf16.msra.mxu2 %v788_v40 }
  0x1d   :  { %353 = vmatpush.bf16.msra.mxu1 %v792_v41  ;;  %879 = vmatpush.bf16.msra.mxu3 %v792_v41 }
  0x20   :  { %305 = vmatpush.bf16.msra.mxu0 %v780_v46  ;;  %872 = vmatpush.bf16.msra.mxu2 %v780_v46 }
  0x21   :  { %354 = vmatpush.bf16.msra.mxu1 %v784_v47  ;;  %880 = vmatpush.bf16.msra.mxu3 %v784_v47 }
  0x23   :  { %306 = vmatmul.bf16.vlgmr.msra.gmra.mxu0 %v841_v48  ;;  %326 = vmatmul.bf16.vlgmr.msra.gmra.mxu2 %v845_v49 }
  0x24   :  { %355 = vmatmul.bf16.vlgmr.msra.gmra.mxu1 %v841_v48  ;;  %375 = vmatmul.bf16.vlgmr.msra.gmra.mxu3 %v845_v49 }
  0x33   :  { %311 = vmatmul.bf16.gmra.mxu0 %v842_v50  ;;  %331 = vmatmul.bf16.gmra.mxu2 %v846_v51 }
  0x34   :  { %360 = vmatmul.bf16.gmra.mxu1 %v842_v50  ;;  %380 = vmatmul.bf16.gmra.mxu3 %v846_v51 }
  0x43   :  { %316 = vmatmul.bf16.gmra.mxu0 %v843_v52  ;;  %336 = vmatmul.bf16.gmra.mxu2 %v847_v53 }
  0x44   :  { %365 = vmatmul.bf16.gmra.mxu1 %v843_v52  ;;  %385 = vmatmul.bf16.gmra.mxu3 %v847_v53 }
  0x53   :  { %321 = vmatmul.bf16.gmra.mxu0 %v844_v54  ;;  %341 = vmatmul.bf16.gmra.mxu2 %v848_v55 }
  0x54   :  { %370 = vmatmul.bf16.gmra.mxu1 %v844_v54  ;;  %390 = vmatmul.bf16.gmra.mxu3 %v848_v55 }
  0xa0   :  { %v307_v61 = vpop.f32.mrf.mxu0 }
  0xa1   :  { %v501_v63 = vadd.f32 %v1037_v58, %v307_v61  ;;  %v356_v0 = vpop.f32.mrf.mxu1 }
  0xa2   :  { %v502_v1 = vadd.f32 %v1039_v59, %v356_v0 }
  0xa3   :  { %vm533_vm0 = vcmp.gt.f32.partialorder %v501_v63, 0.0  ;;  %v571_v2 = vmul.f32 %v1041_v60, %v501_v63 }
  0xa4   :  { %vm534_vm1 = vcmp.gt.f32.partialorder %v502_v1, 0.0  ;;  %v572_v3 = vmul.f32 %v1043_v62, %v502_v1 }
  0xa5   :  { %v603_v4 = vsel %vm533_vm0, %v501_v63, %v571_v2 }
  0xa6   :  { %635 = vst [vmem:[%s1212_s4] sm:$0xff] %v603_v4  ;;  %v604_v5 = vsel %vm534_vm1, %v502_v1, %v572_v3  ;;  %v327_v6 = vpop.f32.mrf.mxu2 }
  0xa7   :  { %636 = vst [vmem:[%s1212_s4 + $0x8] sm:$0xff] %v604_v5  ;;  %v517_v7 = vadd.f32 %v1037_v58, %v327_v6  ;;  %v376_v8 = vpop.f32.mrf.mxu3 }
  0xa8   :  { %v518_v9 = vadd.f32 %v1039_v59, %v376_v8  ;;  %v309_v10 = vpop.f32.mrf.mxu0 }
  0xa9   :  { %vm549_vm2 = vcmp.gt.f32.partialorder %v517_v7, 0.0  ;;  %v587_v11 = vmul.f32 %v1041_v60, %v517_v7  ;;  %v503_v12 = vadd.f32 %v1037_v58, %v309_v10  ;;  %v358_v13 = vpop.f32.mrf.mxu1 }
  0xaa   :  { %vm550_vm3 = vcmp.gt.f32.partialorder %v518_v9, 0.0  ;;  %v588_v14 = vmul.f32 %v1043_v62, %v518_v9  ;;  %v504_v15 = vadd.f32 %v1039_v59, %v358_v13 }
  0xab   :  { %v619_v16 = vsel %vm549_vm2, %v517_v7, %v587_v11  ;;  %vm535_vm4 = vcmp.gt.f32.partialorder %v503_v12, 0.0  ;;  %v573_v17 = vmul.f32 %v1041_v60, %v503_v12 }
  0xac   :  { %651 = vst [vmem:[%s1212_s4 + $0x80] sm:$0xff] %v619_v16  ;;  %v620_v18 = vsel %vm550_vm3, %v518_v9, %v588_v14  ;;  %vm536_vm5 = vcmp.gt.f32.partialorder %v504_v15, 0.0  ;;  %v574_v19 = vmul.f32 %v1043_v62, %v504_v15 }
  0xad   :  { %652 = vst [vmem:[%s1212_s4 + $0x88] sm:$0xff] %v620_v18  ;;  %v605_v20 = vsel %vm535_vm4, %v503_v12, %v573_v17 }
  0xae   :  { %637 = vst [vmem:[%s1212_s4 + $0x10] sm:$0xff] %v605_v20  ;;  %v715_v21 = vadd.f32 %v605_v20, %v603_v4  ;;  %v606_v22 = vsel %vm536_vm5, %v504_v15, %v574_v19  ;;  %v329_v23 = vpop.f32.mrf.mxu2 }
  0xaf   :  { %638 = vst [vmem:[%s1212_s4 + $0x18] sm:$0xff] %v606_v22  ;;  %v519_v24 = vadd.f32 %v1037_v58, %v329_v23  ;;  %v378_v25 = vpop.f32.mrf.mxu3 }
  0xb0   :  { %v730_v26 = vrot.slane %v715_v21, 4  ;;  %v520_v27 = vadd.f32 %v1039_v59, %v378_v25  ;;  %v312_v28 = vpop.f32.mrf.mxu0 }
  0xb1   :  { %vm551_vm6 = vcmp.gt.f32.partialorder %v519_v24, 0.0  ;;  %v589_v29 = vmul.f32 %v1041_v60, %v519_v24  ;;  %v505_v30 = vadd.f32 %v1037_v58, %v312_v28  ;;  %v361_v31 = vpop.f32.mrf.mxu1 }
  0xb2   :  { %v731_v32 = vadd.f32 %v730_v26, %v715_v21  ;;  %vm552_vm7 = vcmp.gt.f32.partialorder %v520_v27, 0.0  ;;  %v590_v33 = vmul.f32 %v1043_v62, %v520_v27  ;;  %v506_v34 = vadd.f32 %v1039_v59, %v361_v31 }
  0xb3   :  { %v621_v35 = vsel %vm551_vm6, %v519_v24, %v589_v29  ;;  %vm537_vm8 = vcmp.gt.f32.partialorder %v505_v30, 0.0  ;;  %v575_v36 = vmul.f32 %v1041_v60, %v505_v30 }
  0xb4   :  { %v732_v37 = vrot.slane %v731_v32, 2  ;;  %653 = vst [vmem:[%s1212_s4 + $0x90] sm:$0xff] %v621_v35  ;;  %v622_v38 = vsel %vm552_vm7, %v520_v27, %v590_v33  ;;  %vm538_vm9 = vcmp.gt.f32.partialorder %v506_v34, 0.0  ;;  %v576_v39 = vmul.f32 %v1043_v62, %v506_v34 }
  0xb5   :  { %654 = vst [vmem:[%s1212_s4 + $0x98] sm:$0xff] %v622_v38  ;;  %v607_v40 = vsel %vm537_vm8, %v505_v30, %v575_v36 }
  0xb6   :  { %v733_v41 = vadd.f32 %v732_v37, %v731_v32  ;;  %639 = vst [vmem:[%s1212_s4 + $0x20] sm:$0xff] %v607_v40  ;;  %v608_v42 = vsel %vm538_vm9, %v506_v34, %v576_v39  ;;  %v332_v43 = vpop.f32.mrf.mxu2 }
  0xb7   :  { %640 = vst [vmem:[%s1212_s4 + $0x28] sm:$0xff] %v608_v42  ;;  %v521_v44 = vadd.f32 %v1037_v58, %v332_v43  ;;  %v381_v45 = vpop.f32.mrf.mxu3 }
  0xb8   :  { %v734_v46 = vrot.slane %v733_v41, 1  ;;  %v522_v47 = vadd.f32 %v1039_v59, %v381_v45  ;;  %v314_v48 = vpop.f32.mrf.mxu0 }
  0xb9   :  { %vm553_vm10 = vcmp.gt.f32.partialorder %v521_v44, 0.0  ;;  %v591_v49 = vmul.f32 %v1041_v60, %v521_v44  ;;  %v507_v50 = vadd.f32 %v1037_v58, %v314_v48  ;;  %v363_v51 = vpop.f32.mrf.mxu1 }
  0xba   :  { %v735_v52 = vadd.f32 %v734_v46, %v733_v41  ;;  %vm554_vm11 = vcmp.gt.f32.partialorder %v522_v47, 0.0  ;;  %v592_v53 = vmul.f32 %v1043_v62, %v522_v47  ;;  %v508_v54 = vadd.f32 %v1039_v59, %v363_v51 }
  0xbb   :  { %v623_v55 = vsel %vm553_vm10, %v521_v44, %v591_v49  ;;  %vm539_vm12 = vcmp.gt.f32.partialorder %v507_v50, 0.0  ;;  %v577_v56 = vmul.f32 %v1041_v60, %v507_v50 }
  0xbc   :  { %736 = vst [vmem:[%s1213_s5] sm:$0x1] %v735_v52  ;;  %v624_v57 = vsel %vm554_vm11, %v522_v47, %v592_v53  ;;  %vm540_vm13 = vcmp.gt.f32.partialorder %v508_v54, 0.0  ;;  %v578_v61 = vmul.f32 %v1043_v62, %v508_v54 }
  0xbd   :  { %655 = vst [vmem:[%s1212_s4 + $0xa0] sm:$0xff] %v623_v55  ;;  %v609_v63 = vsel %vm539_vm12, %v507_v50, %v577_v56 }
  0xbe   :  { %656 = vst [vmem:[%s1212_s4 + $0xa8] sm:$0xff] %v624_v57  ;;  %v610_v0 = vsel %vm540_vm13, %v508_v54, %v578_v61  ;;  %v334_v1 = vpop.f32.mrf.mxu2 }
  0xbf   :  { %641 = vst [vmem:[%s1212_s4 + $0x30] sm:$0xff] %v609_v63  ;;  %v523_v2 = vadd.f32 %v1037_v58, %v334_v1  ;;  %v383_v3 = vpop.f32.mrf.mxu3 }
  0xc0   :  { %642 = vst [vmem:[%s1212_s4 + $0x38] sm:$0xff] %v610_v0  ;;  %v524_v4 = vadd.f32 %v1039_v59, %v383_v3  ;;  %v317_v5 = vpop.f32.mrf.mxu0 }
  0xc1   :  { %vm555_vm14 = vcmp.gt.f32.partialorder %v523_v2, 0.0  ;;  %v593_v6 = vmul.f32 %v1041_v60, %v523_v2  ;;  %v509_v7 = vadd.f32 %v1037_v58, %v317_v5  ;;  %v366_v8 = vpop.f32.mrf.mxu1 }
  0xc2   :  { %vm556_vm15 = vcmp.gt.f32.partialorder %v524_v4, 0.0  ;;  %v594_v9 = vmul.f32 %v1043_v62, %v524_v4  ;;  %v510_v10 = vadd.f32 %v1039_v59, %v366_v8 }
  0xc3   :  { %v625_v11 = vsel %vm555_vm14, %v523_v2, %v593_v6  ;;  %vm541_vm0 = vcmp.gt.f32.partialorder %v509_v7, 0.0  ;;  %v579_v12 = vmul.f32 %v1041_v60, %v509_v7 }
  0xc4   :  { %657 = vst [vmem:[%s1212_s4 + $0xb0] sm:$0xff] %v625_v11  ;;  %v626_v13 = vsel %vm556_vm15, %v524_v4, %v594_v9  ;;  %vm542_vm1 = vcmp.gt.f32.partialorder %v510_v10, 0.0  ;;  %v580_v14 = vmul.f32 %v1043_v62, %v510_v10 }
  0xc5   :  { %658 = vst [vmem:[%s1212_s4 + $0xb8] sm:$0xff] %v626_v13  ;;  %v611_v15 = vsel %vm541_vm0, %v509_v7, %v579_v12 }
  0xc6   :  { %643 = vst [vmem:[%s1212_s4 + $0x40] sm:$0xff] %v611_v15  ;;  %v612_v16 = vsel %vm542_vm1, %v510_v10, %v580_v14  ;;  %v337_v17 = vpop.f32.mrf.mxu2 }
  0xc7   :  { %644 = vst [vmem:[%s1212_s4 + $0x48] sm:$0xff] %v612_v16  ;;  %v525_v18 = vadd.f32 %v1037_v58, %v337_v17  ;;  %v386_v19 = vpop.f32.mrf.mxu3 }
  0xc8   :  { %v526_v20 = vadd.f32 %v1039_v59, %v386_v19  ;;  %v319_v21 = vpop.f32.mrf.mxu0 }
  0xc9   :  { %vm557_vm2 = vcmp.gt.f32.partialorder %v525_v18, 0.0  ;;  %v595_v22 = vmul.f32 %v1041_v60, %v525_v18  ;;  %v511_v23 = vadd.f32 %v1037_v58, %v319_v21  ;;  %v368_v24 = vpop.f32.mrf.mxu1 }
  0xca   :  { %vm558_vm3 = vcmp.gt.f32.partialorder %v526_v20, 0.0  ;;  %v596_v25 = vmul.f32 %v1043_v62, %v526_v20  ;;  %v512_v26 = vadd.f32 %v1039_v59, %v368_v24 }
  0xcb   :  { %v627_v27 = vsel %vm557_vm2, %v525_v18, %v595_v22  ;;  %vm543_vm4 = vcmp.gt.f32.partialorder %v511_v23, 0.0  ;;  %v581_v28 = vmul.f32 %v1041_v60, %v511_v23 }
  0xcc   :  { %659 = vst [vmem:[%s1212_s4 + $0xc0] sm:$0xff] %v627_v27  ;;  %v628_v29 = vsel %vm558_vm3, %v526_v20, %v596_v25  ;;  %vm544_vm5 = vcmp.gt.f32.partialorder %v512_v26, 0.0  ;;  %v582_v30 = vmul.f32 %v1043_v62, %v512_v26 }
  0xcd   :  { %660 = vst [vmem:[%s1212_s4 + $0xc8] sm:$0xff] %v628_v29  ;;  %v613_v31 = vsel %vm543_vm4, %v511_v23, %v581_v28 }
  0xce   :  { %645 = vst [vmem:[%s1212_s4 + $0x50] sm:$0xff] %v613_v31  ;;  %v614_v32 = vsel %vm544_vm5, %v512_v26, %v582_v30  ;;  %v339_v33 = vpop.f32.mrf.mxu2 }
  0xcf   :  { %646 = vst [vmem:[%s1212_s4 + $0x58] sm:$0xff] %v614_v32  ;;  %v527_v34 = vadd.f32 %v1037_v58, %v339_v33  ;;  %v388_v35 = vpop.f32.mrf.mxu3 }
  0xd0   :  { %v528_v36 = vadd.f32 %v1039_v59, %v388_v35  ;;  %v322_v37 = vpop.f32.mrf.mxu0 }
  0xd1   :  { %vm559_vm6 = vcmp.gt.f32.partialorder %v527_v34, 0.0  ;;  %v597_v38 = vmul.f32 %v1041_v60, %v527_v34  ;;  %v513_v39 = vadd.f32 %v1037_v58, %v322_v37  ;;  %v371_v40 = vpop.f32.mrf.mxu1 }
  0xd2   :  { %vm560_vm7 = vcmp.gt.f32.partialorder %v528_v36, 0.0  ;;  %v598_v41 = vmul.f32 %v1043_v62, %v528_v36  ;;  %v514_v42 = vadd.f32 %v1039_v59, %v371_v40 }
  0xd3   :  { %v629_v43 = vsel %vm559_vm6, %v527_v34, %v597_v38  ;;  %vm545_vm8 = vcmp.gt.f32.partialorder %v513_v39, 0.0  ;;  %v583_v44 = vmul.f32 %v1041_v60, %v513_v39 }
  0xd4   :  { %661 = vst [vmem:[%s1212_s4 + $0xd0] sm:$0xff] %v629_v43  ;;  %v630_v45 = vsel %vm560_vm7, %v528_v36, %v598_v41  ;;  %vm546_vm9 = vcmp.gt.f32.partialorder %v514_v42, 0.0  ;;  %v584_v46 = vmul.f32 %v1043_v62, %v514_v42 }
  0xd5   :  { %662 = vst [vmem:[%s1212_s4 + $0xd8] sm:$0xff] %v630_v45  ;;  %v615_v47 = vsel %vm545_vm8, %v513_v39, %v583_v44 }
  0xd6   :  { %647 = vst [vmem:[%s1212_s4 + $0x60] sm:$0xff] %v615_v47  ;;  %v616_v48 = vsel %vm546_vm9, %v514_v42, %v584_v46  ;;  %v342_v49 = vpop.f32.mrf.mxu2 }
  0xd7   :  { %648 = vst [vmem:[%s1212_s4 + $0x68] sm:$0xff] %v616_v48  ;;  %v529_v50 = vadd.f32 %v1037_v58, %v342_v49  ;;  %v391_v51 = vpop.f32.mrf.mxu3 }
  0xd8   :  { %v530_v52 = vadd.f32 %v1039_v59, %v391_v51  ;;  %v324_v53 = vpop.f32.mrf.mxu0 }
  0xd9   :  { %vm561_vm10 = vcmp.gt.f32.partialorder %v529_v50, 0.0  ;;  %v599_v54 = vmul.f32 %v1041_v60, %v529_v50  ;;  %v515_v55 = vadd.f32 %v1037_v58, %v324_v53  ;;  %v373_v56 = vpop.f32.mrf.mxu1 }
  0xda   :  { %vm562_vm11 = vcmp.gt.f32.partialorder %v530_v52, 0.0  ;;  %v600_v57 = vmul.f32 %v1043_v62, %v530_v52  ;;  %v516_v61 = vadd.f32 %v1039_v59, %v373_v56 }
  0xdb   :  { %v631_v63 = vsel %vm561_vm10, %v529_v50, %v599_v54  ;;  %vm547_vm12 = vcmp.gt.f32.partialorder %v515_v55, 0.0  ;;  %v585_v0 = vmul.f32 %v1041_v60, %v515_v55 }
  0xdc   :  { %663 = vst [vmem:[%s1212_s4 + $0xe0] sm:$0xff] %v631_v63  ;;  %v632_v1 = vsel %vm562_vm11, %v530_v52, %v600_v57  ;;  %vm548_vm13 = vcmp.gt.f32.partialorder %v516_v61, 0.0  ;;  %v586_v2 = vmul.f32 %v1043_v62, %v516_v61 }
  0xdd   :  { %664 = vst [vmem:[%s1212_s4 + $0xe8] sm:$0xff] %v632_v1  ;;  %v617_v3 = vsel %vm547_vm12, %v515_v55, %v585_v0 }
  0xde   :  { %649 = vst [vmem:[%s1212_s4 + $0x70] sm:$0xff] %v617_v3  ;;  %v618_v4 = vsel %vm548_vm13, %v516_v61, %v586_v2  ;;  %v344_v5 = vpop.f32.mrf.mxu2 }
  0xdf   :  { %650 = vst [vmem:[%s1212_s4 + $0x78] sm:$0xff] %v618_v4  ;;  %v531_v6 = vadd.f32 %v1037_v58, %v344_v5  ;;  %v393_v7 = vpop.f32.mrf.mxu3 }
  0xe0   :  { %v532_v8 = vadd.f32 %v1039_v59, %v393_v7 }
  0xe1   :  { %vm563_vm14 = vcmp.gt.f32.partialorder %v531_v6, 0.0  ;;  %v601_v9 = vmul.f32 %v1041_v60, %v531_v6 }
  0xe2   :  { %vm564_vm15 = vcmp.gt.f32.partialorder %v532_v8, 0.0  ;;  %v602_v10 = vmul.f32 %v1043_v62, %v532_v8 }
  0xe3   :  { %v633_v11 = vsel %vm563_vm14, %v531_v6, %v601_v9 }
  0xe4   :  { %665 = vst [vmem:[%s1212_s4 + $0xf0] sm:$0xff] %v633_v11  ;;  %v634_v12 = vsel %vm564_vm15, %v532_v8, %v602_v10 }
  0xe5   :  { %666 = vst [vmem:[%s1212_s4 + $0xf8] sm:$0xff] %v634_v12 }

</bundles_post_ra>
